<compile_context>
chip_gen: v7x
topology: tpu7x:2x2x1
jax: 0.10.0
libtpu: 0.0.40
codegen_flags: <defaults>
</compile_context>

<pallas_src>
import jax
import jax.numpy as jnp
from jax.experimental import pallas as pl
from jax.experimental.pallas import tpu as pltpu

_LANES = 512  # lane-dense last dim, multiple of 128


def _identity_kernel(x_ref, o_ref):
    # The entire "compute" of Identity: a VMEM tile copy.
    o_ref[...] = x_ref[...]


def _choose_tiling(n_elems, itemsize):
    """Pick (block_rows, total_rows) for an (total_rows, _LANES) layout."""
    # Sublane granularity: 8 for 4-byte, 16 for 2-byte, 32 for 1-byte dtypes.
    sub = 8 * max(1, 4 // itemsize)

    # ~2 MiB per block: with double-buffered in + out that is ~8 MiB VMEM,
    # well under every generation's scoped-VMEM default (16 MiB on v5e).
    target_block_bytes = 2 * 1024 * 1024
    max_block_rows = max(
        sub, (target_block_bytes // (_LANES * itemsize)) // sub * sub
    )

    rows_needed = -(-n_elems // _LANES)           # ceil(n / lanes)
    rows_needed = -(-rows_needed // sub) * sub    # round up to sublane multiple

    if rows_needed > max_block_rows:
        block_rows = max_block_rows
    elif rows_needed > sub:
        # Split into >= 2 grid steps so a 2-TC chip (v7x) shards the grid.
        half = (rows_needed + 1) // 2
        block_rows = -(-half // sub) * sub
    else:
        block_rows = rows_needed

    total_rows = -(-rows_needed // block_rows) * block_rows
    return block_rows, total_rows


@jax.jit
def identity_pallas(x):
    """Identity forward: returns input unchanged (same shape, same dtype)."""
    orig_shape = x.shape
    n = x.size
    if n == 0:
        return x

    itemsize = jnp.dtype(x.dtype).itemsize
    block_rows, total_rows = _choose_tiling(n, itemsize)
    padded_n = total_rows * _LANES
    grid = (total_rows // block_rows,)

    x_flat = x.reshape(-1)
    if padded_n != n:
        x_flat = jnp.pad(x_flat, (0, padded_n - n))
    x2d = x_flat.reshape(total_rows, _LANES)

    out = pl.pallas_call(
        _identity_kernel,
        out_shape=jax.ShapeDtypeStruct((total_rows, _LANES), x.dtype),
        grid=grid,
        in_specs=[pl.BlockSpec((block_rows, _LANES), lambda i: (i, 0))],
        out_specs=pl.BlockSpec((block_rows, _LANES), lambda i: (i, 0)),
        input_output_aliases={0: 0},
        compiler_params=pltpu.CompilerParams(
            dimension_semantics=("parallel",),
        ),
    )(x2d)

    out_flat = out.reshape(-1)
    if padded_n != n:
        out_flat = out_flat[:n]
    return out_flat.reshape(orig_shape)


if __name__ == "__main__":
    key = jax.random.PRNGKey(0)

    # Small NCHW input consistent with a conv-style model.
    x = jax.random.normal(key, (2, 4, 16, 16), dtype=jnp.float32)
    y = jax.block_until_ready(identity_pallas(x))
    assert y.shape == x.shape, (y.shape, x.shape)
    assert y.dtype == x.dtype, (y.dtype, x.dtype)
    assert bool(jnp.all(y == x)), "Identity output does not match input"

    # Non-128-divisible size exercises the pad-and-tile path.
    k2 = jax.random.PRNGKey(1)
    x2 = jax.random.normal(k2, (3, 5, 7, 11), dtype=jnp.float32)
    y2 = jax.block_until_ready(identity_pallas(x2))
    assert y2.shape == x2.shape and y2.dtype == x2.dtype
    assert bool(jnp.all(y2 == x2)), "Identity output (padded path) mismatch"

    print("KERNEL_OK")
</pallas_src>

<mosaic_0001>
module attributes {stable_mosaic.version = 11 : i64} {
  func.func @_identity_kernel(%arg0: i32, %arg1: memref<8x512xf32, #tpu.memory_space<vmem>>, %arg2: memref<8x512xf32, #tpu.memory_space<vmem>>) attributes {dimension_semantics = [#tpu.dimension_semantics<parallel>], iteration_bounds = array<i64: 1>, scalar_prefetch = 0 : i64, scratch_operands = 0 : i64, tpu.core_type = #tpu.core_type<tc>, window_params = [{transform_indices = @transform_0, window_bounds = array<i64: 8, 512>}, {transform_indices = @transform_1, window_bounds = array<i64: 8, 512>}]} {
    %c0 = arith.constant 0 : index
    %c0_0 = arith.constant 0 : index
    %0 = vector.load %arg1[%c0, %c0_0] : memref<8x512xf32, #tpu.memory_space<vmem>>, vector<8x512xf32>
    %c0_1 = arith.constant 0 : index
    %c0_2 = arith.constant 0 : index
    %1 = vector.load %arg2[%c0_1, %c0_2] : memref<8x512xf32, #tpu.memory_space<vmem>>, vector<8x512xf32>
    tpu.vector_store %arg2[%c0_1, %c0_2], %0 {strides = array<i32>} : memref<8x512xf32, #tpu.memory_space<vmem>>, vector<8x512xf32>,
    return
  }
  func.func @transform_0(%arg0: i32) -> (i32, i32) {
    %c0_i32 = arith.constant 0 : i32
    %c0_i32_0 = arith.constant 0 : i32
    return %arg0, %c0_i32 : i32, i32
  }
  func.func @transform_1(%arg0: i32) -> (i32, i32) {
    %c0_i32 = arith.constant 0 : i32
    %c0_i32_0 = arith.constant 0 : i32
    return %arg0, %c0_i32 : i32, i32
  }
}

</mosaic_0001>

<bundles_post_ra>
// kernel: identity_pallas.1
= control target key start
LH: loop header
LB: loop body
LE: loop exit
PB: predicated region body
PF: predicated region fallthrough
CT: control target
= control target key end

     0   :  { %s54_s0 = inlined_call_operand.vmem [shape: f32[8,512], index: 0, kind: input, shape index: {}, may-alias: {0,1}]   ;;  %s55_s1 = inlined_call_operand.vmem [shape: f32[8,512], index: 1, kind: output, shape index: {}, may-alias: {0,1}]  }
   0x1   :  { %v8_v0 = vld [vmem:[%s54_s0] sm:$0xff]  ;;  %v9_v1 = vld [vmem:[%s54_s0 + $0x8] sm:$0xff]  ;;  %v10_v2 = vld [vmem:[%s54_s0 + $0x10] sm:$0xff] }
   0x2   :  { %12 = vst [vmem:[%s55_s1] sm:$0xff] %v8_v0  ;;  %13 = vst [vmem:[%s55_s1 + $0x8] sm:$0xff] %v9_v1 }
   0x3   :  { %14 = vst [vmem:[%s55_s1 + $0x10] sm:$0xff] %v10_v2 }
   0xa   :  { %v11_v3 = vld [vmem:[%s54_s0 + $0x18] sm:$0xff] }
   0xb   :  { %15 = vst [vmem:[%s55_s1 + $0x18] sm:$0xff] %v11_v3 }

</bundles_post_ra>
